<compile_context>
chip_gen: v6e
topology: v6e:2x2x1
jax: 0.10.0
libtpu: 0.0.40
codegen_flags: <defaults>
</compile_context>

<pallas_src>
import jax
import jax.numpy as jnp
from jax.experimental import pallas as pl
from jax.experimental.pallas import tpu as pltpu


def _linear_kernel(x_ref, w_ref, b_ref, o_ref):
    # One batch tile per grid step; K=512 contracted in a single MXU pass.
    # bf16 cast happens here (VPU work, free vs. an extra HBM pass upstream).
    x = x_ref[...].astype(jnp.bfloat16)
    acc = jnp.dot(x, w_ref[...], preferred_element_type=jnp.float32)
    o_ref[...] = (acc + b_ref[...]).astype(o_ref.dtype)


def prepare_linear_params(weight, bias, compute_dtype=jnp.bfloat16):
    """One-time parameter prep (constant-folded under jit / done at setup).

    weight: (num_classes, 512)  PyTorch Linear layout (out, in)
    bias:   (num_classes,)
    Returns (w_t_padded, bias_padded, num_classes) with a lane-dense
    (K, C_pad) layout, C_pad a multiple of 128 (128 for num_classes <= 128).
    """
    C, K = weight.shape
    C_pad = ((C + 127) // 128) * 128
    w_t = jnp.zeros((K, C_pad), compute_dtype).at[:, :C].set(
        weight.T.astype(compute_dtype)
    )
    b_pad = jnp.zeros((1, C_pad), jnp.float32).at[:, :C].set(
        bias.astype(jnp.float32)
    )
    return w_t, b_pad, C


def _round_up(x, m):
    return ((x + m - 1) // m) * m


def resnet_discriminator_forward(x, w_t, b_pad, num_classes):
    """
    x:     (B, 512) float32 (cast to bf16 inside the kernel)
    w_t:   (512, C_pad) pre-transposed, zero-padded bf16 weight
    b_pad: (1, C_pad) zero-padded f32 bias
    returns (B, num_classes) float32
    """
    B, K = x.shape
    C_pad = w_t.shape[1]

    # Batch tiling: TB multiple of 8, capped at 1024 rows.  Ensure nb >= 2
    # whenever there are at least two sublane groups of rows, so the pipeline
    # overlaps and v7x can shard the batch axis across both TensorCores.
    TB_MAX = 1024
    B8 = _round_up(B, 8)
    if B8 >= 16:
        TB = min(TB_MAX, _round_up(B8 // 2, 8))
    else:
        TB = 8
    nb = pl.cdiv(B, TB)

    out = pl.pallas_call(
        _linear_kernel,
        out_shape=jax.ShapeDtypeStruct((B, C_pad), jnp.bfloat16),
        grid_spec=pl.GridSpec(
            grid=(nb,),
            in_specs=[
                pl.BlockSpec((TB, K), lambda i: (i, 0)),       # stream x
                pl.BlockSpec((K, C_pad), lambda i: (0, 0)),    # resident weight
                pl.BlockSpec((1, C_pad), lambda i: (0, 0)),    # resident bias
            ],
            out_specs=pl.BlockSpec((TB, C_pad), lambda i: (i, 0)),
        ),
        compiler_params=pltpu.CompilerParams(
            # Batch axis is independent -> shard across v7x's two TensorCores.
            dimension_semantics=("parallel",),
        ),
    )(x, w_t, b_pad)

    # Tiny class-dim slice + cast; fuses into the consumer under jit.
    return out[:, :num_classes].astype(jnp.float32)


if __name__ == "__main__":
    num_classes = 16
    batch = 2
    in_features = 512

    key = jax.random.PRNGKey(0)
    kx, kw, kb = jax.random.split(key, 3)

    # Deterministic synthetic parameters (PyTorch Linear shapes).
    bound = 1.0 / (in_features ** 0.5)
    weight = jax.random.uniform(
        kw, (num_classes, in_features), jnp.float32, -bound, bound
    )
    bias = jax.random.uniform(kb, (num_classes,), jnp.float32, -bound, bound)

    x = jax.random.normal(kx, (batch, in_features), jnp.float32)

    # One-time parameter prep (lane-dense padded + pre-transposed).
    w_t, b_pad, C = prepare_linear_params(weight, bias)

    out = resnet_discriminator_forward(x, w_t, b_pad, C)
    out = jax.block_until_ready(out)

    # Reference check against plain JAX.  bf16 x/weight + bf16 output store is
    # an intentional precision trade for this classifier head -> loosened tol.
    ref = x @ weight.T + bias
    assert out.shape == (batch, num_classes)
    assert jnp.allclose(out, ref, atol=2e-2, rtol=2e-2)

    print("KERNEL_OK")
</pallas_src>

<mosaic_0001>
module attributes {stable_mosaic.version = 11 : i64} {
  func.func @_linear_kernel(%arg0: i32, %arg1: memref<8x512xf32, #tpu.memory_space<vmem>>, %arg2: memref<512x128xbf16, #tpu.memory_space<vmem>>, %arg3: memref<1x128xf32, #tpu.memory_space<vmem>>, %arg4: memref<8x128xbf16, #tpu.memory_space<vmem>>) attributes {dimension_semantics = [#tpu.dimension_semantics<parallel>], iteration_bounds = array<i64: 1>, scalar_prefetch = 0 : i64, scratch_operands = 0 : i64, tpu.core_type = #tpu.core_type<tc>, window_params = [{transform_indices = @transform_0, window_bounds = array<i64: 8, 512>}, {pipeline_mode = #tpu.pipeline_mode<synchronous>, transform_indices = @transform_1, window_bounds = array<i64: 512, 128>}, {pipeline_mode = #tpu.pipeline_mode<synchronous>, transform_indices = @transform_2, window_bounds = array<i64: 1, 128>}, {transform_indices = @transform_3, window_bounds = array<i64: 8, 128>}]} {
    %c0 = arith.constant 0 : index
    %c0_0 = arith.constant 0 : index
    %0 = vector.load %arg1[%c0, %c0_0] : memref<8x512xf32, #tpu.memory_space<vmem>>, vector<8x512xf32>
    %1 = arith.truncf %0 : vector<8x512xf32> to vector<8x512xbf16>
    %c0_1 = arith.constant 0 : index
    %c0_2 = arith.constant 0 : index
    %2 = vector.load %arg2[%c0_1, %c0_2] : memref<512x128xbf16, #tpu.memory_space<vmem>>, vector<512x128xbf16>
    %cst = arith.constant dense<0.000000e+00> : vector<8x128xf32>
    %3 = tpu.matmul %1, %2, %cst {dimension_numbers = #tpu.dot_dimension_numbers<[1], [0], [0], [1], [0, 0, 1, 1], [], []>} : vector<8x512xbf16>, vector<512x128xbf16>, vector<8x128xf32> -> vector<8x128xf32>
    %c0_3 = arith.constant 0 : index
    %c0_4 = arith.constant 0 : index
    %4 = vector.load %arg3[%c0_3, %c0_4] : memref<1x128xf32, #tpu.memory_space<vmem>>, vector<1x128xf32>
    %5 = vector.broadcast %4 : vector<1x128xf32> to vector<8x128xf32>
    %6 = arith.addf %3, %5 : vector<8x128xf32>
    %7 = arith.truncf %6 : vector<8x128xf32> to vector<8x128xbf16>
    %c0_5 = arith.constant 0 : index
    %c0_6 = arith.constant 0 : index
    %8 = vector.load %arg4[%c0_5, %c0_6] : memref<8x128xbf16, #tpu.memory_space<vmem>>, vector<8x128xbf16>
    tpu.vector_store %arg4[%c0_5, %c0_6], %7 {strides = array<i32>} : memref<8x128xbf16, #tpu.memory_space<vmem>>, vector<8x128xbf16>,
    return
  }
  func.func @transform_0(%arg0: i32) -> (i32, i32) {
    %c0_i32 = arith.constant 0 : i32
    %c0_i32_0 = arith.constant 0 : i32
    return %arg0, %c0_i32 : i32, i32
  }
  func.func @transform_1(%arg0: i32) -> (i32, i32) {
    %c0_i32 = arith.constant 0 : i32
    %c0_i32_0 = arith.constant 0 : i32
    %c0_i32_1 = arith.constant 0 : i32
    return %c0_i32, %c0_i32_0 : i32, i32
  }
  func.func @transform_2(%arg0: i32) -> (i32, i32) {
    %c0_i32 = arith.constant 0 : i32
    %c0_i32_0 = arith.constant 0 : i32
    %c0_i32_1 = arith.constant 0 : i32
    return %c0_i32, %c0_i32_0 : i32, i32
  }
  func.func @transform_3(%arg0: i32) -> (i32, i32) {
    %c0_i32 = arith.constant 0 : i32
    %c0_i32_0 = arith.constant 0 : i32
    return %arg0, %c0_i32 : i32, i32
  }
}

</mosaic_0001>

<bundles_post_ra>
// kernel: tpu_custom_call.1
= control target key start
LH: loop header
LB: loop body
LE: loop exit
PB: predicated region body
PF: predicated region fallthrough
CT: control target
= control target key end

     0   :  { %8 = vsyncpa [#allocation3], 0  ;;  %s728_s0 = inlined_call_operand.hbm [shape: f32[2,512], index: 0, kind: input, shape index: {}]   ;;  %s729_s1 = inlined_call_operand.hbm [shape: bf16[512,128], index: 1, kind: input, shape index: {}]   ;;  %s730_s2 = inlined_call_operand.vmem [shape: f32[1,128], index: 2, kind: input, shape index: {}]   ;;  %s731_s3 = inlined_call_operand.hbm [shape: bf16[2,128], index: 3, kind: output, shape index: {}]  }
   0x1   :  { %9 = vsyncpa [#allocation6], 0 }
   0x2   :  { %10 = vsyncpa [#allocation4], 0 }
   0x3   :  { %15 = vsyncadd [#allocation3], 384  ;;  %s685_s12 = smov [#allocation2]  }
   0x4   :  { %s16_s13 = sshll.u32 %s685_s12, 4  ;;  %s17_s13 = int_to_ptr.vmem [resolvable:$true] %s16_s13 }
   0x5   :  { %s627_s14 = scalar_lea.vmem %s17_s13, 128  ;;  %s631_s15 = scalar_lea.vmem %s17_s13, 512 }
   0x6   :  { %p628_p0 = scmp.ne.s32.totalorder %s17_s13, %s627_s14  ;;  %p632_p1 = scmp.lt.s32.totalorder %s17_s13, %s17_s13 }
   0x7   :  { %p633_p2 = scmp.lt.s32.totalorder %s631_s15, %s627_s14 }
   0x9   :  { %p634_p3 = por %p633_p2, %p632_p1 }
   0xb   :  { %p635_p4 = pnand %p634_p3, %p628_p0 }
   0xd   :  { %638 = shalt.err (!%p635_p4)
}
   0xe   :  { %s686_s16 = smov 128   ;;  %s687_s17 = smov 8  }
   0xf   :  { %22 = dma.hbm_to_vmem [thread:$0]  %s728_s0, 128, %s17_s13, [#allocation3], %s686_s16, %s686_s16, %s687_s17  }
  0x10   :  { %s688_s20 = smov [#allocation5]  }
  0x11   :  { %s28_s21 = sshll.u32 %s688_s20, 4  ;;  %s29_s21 = int_to_ptr.vmem [resolvable:$true] %s28_s21 }
  0x12   :  { %s647_s22 = scalar_lea.vmem %s29_s21, 4096  ;;  %p652_p6 = scmp.lt.s32.totalorder %s29_s21, %s29_s21 }
  0x13   :  { %p648_p5 = scmp.ne.s32.totalorder %s29_s21, %s647_s22  ;;  %p653_p7 = scmp.lt.s32.totalorder %s647_s22, %s647_s22 }
  0x15   :  { %p654_p8 = por %p653_p7, %p652_p6 }
  0x17   :  { %p655_p9 = pnand %p654_p8, %p648_p5 }
  0x19   :  { %658 = shalt.err (!%p655_p9)
}
  0x1a   :  { %s689_s23 = smov 64   ;;  %s690_s24 = smov 4  }
  0x1b   :  { %34 = dma.hbm_to_vmem [thread:$0]  %s729_s1, 4096, %s29_s21, [#allocation6], %s689_s23, %s689_s23, %s690_s24  }
  0x1c   :  { %679 = dma.done.wait [#allocation3], 512  }
  0x1d   :  { %680 = vsyncadd [#allocation3], 4294966784 }
  0x1e   :  { %681 = dma.done.wait [#allocation6], 4096  }
  0x1f   :  { %682 = vsyncadd [#allocation6], 4294963200  ;;  %v581_v0 = vld [vmem:[#allocation5 + $0x78] sm:$0xff]   ;;  %v585_v4 = vld [vmem:[#allocation5 + $0x70] sm:$0xff]   ;;  %v691_v24 = vmov 1983009808   ;;  %v59_v26 = vlaneseq }
  0x20   :  { %v582_v1 = vld [vmem:[#allocation5 + $0xf8] sm:$0xff]   ;;  %526 = vmatprep.subr.bf16.mxu0 %v581_v0  ;;  %v586_v5 = vld [vmem:[#allocation5 + $0xf0] sm:$0xff]   ;;  %v589_v8 = vld [vmem:[#allocation5 + $0x68] sm:$0xff]   ;;  %v57_v25 = vunpack.c.l.s4 %v691_v24  ;;  %v692_v54 = vmov 1966171168  }
  0x21   :  { %v583_v2 = vld [vmem:[#allocation5 + $0x38] sm:$0xff]   ;;  %548 = vmatprep.subr.bf16.mxu1 %v582_v1  ;;  %v587_v6 = vld [vmem:[#allocation5 + $0x30] sm:$0xff]   ;;  %v590_v9 = vld [vmem:[#allocation5 + $0xe8] sm:$0xff]   ;;  %v60_v32 = vshrl.u32 %v59_v26, 7  ;;  %v442_v55 = vunpack.c.l.s4 %v692_v54 }
  0x22   :  { %v584_v3 = vld [vmem:[#allocation5 + $0xb8] sm:$0xff]   ;;  %527 = vmatpush3.bf16.msra.mxu0 %v583_v2  ;;  %v588_v7 = vld [vmem:[#allocation5 + $0xb0] sm:$0xff]   ;;  %v591_v10 = vld [vmem:[#allocation5 + $0x28] sm:$0xff]   ;;  %v58_v31 = vunpack.c.0.s8 %v57_v25 }
  0x23   :  { %549 = vmatpush3.bf16.msra.mxu1 %v584_v3  ;;  %528 = vmatprep.subr.bf16.mxu0 %v585_v4  ;;  %v592_v11 = vld [vmem:[#allocation5 + $0xa8] sm:$0xff]   ;;  %v593_v12 = vld [vmem:[#allocation5 + $0x60] sm:$0xff]   ;;  %v597_v16 = vld [vmem:[#allocation5 + $0x58] sm:$0xff]   ;;  %v443_v62 = vunpack.c.0.s8 %v442_v55 }
  0x24   :  { %550 = vmatprep.subr.bf16.mxu1 %v586_v5  ;;  %v594_v13 = vld [vmem:[#allocation5 + $0xe0] sm:$0xff]   ;;  %v598_v17 = vld [vmem:[#allocation5 + $0xd8] sm:$0xff]   ;;  %v601_v20 = vld [vmem:[#allocation5 + $0x50] sm:$0xff]   ;;  %v61_v37 = vsub.s32 %v58_v31, %v60_v32 }
  0x25   :  { %v595_v14 = vld [vmem:[#allocation5 + $0x20] sm:$0xff]   ;;  %v599_v18 = vld [vmem:[#allocation5 + $0x18] sm:$0xff]   ;;  %v602_v21 = vld [vmem:[#allocation5 + $0xd0] sm:$0xff]   ;;  %v446_v5 = vsub.s32 %v443_v62, %v60_v32 }
  0x26   :  { %529 = vmatpush3.bf16.msra.mxu0 %v587_v6  ;;  %v596_v15 = vld [vmem:[#allocation5 + $0xa0] sm:$0xff]   ;;  %v600_v19 = vld [vmem:[#allocation5 + $0x98] sm:$0xff]   ;;  %v603_v22 = vld [vmem:[#allocation5 + $0x10] sm:$0xff]  }
  0x27   :  { %551 = vmatpush3.bf16.msra.mxu1 %v588_v7  ;;  %530 = vmatprep.subr.bf16.mxu0 %v589_v8  ;;  %v604_v23 = vld [vmem:[#allocation5 + $0x90] sm:$0xff]   ;;  %v605_v27 = vld [vmem:[#allocation5 + $0x48] sm:$0xff]   ;;  %v609_v33 = vld [vmem:[#allocation5 + $0x40] sm:$0xff]  }
  0x28   :  { %552 = vmatprep.subr.bf16.mxu1 %v590_v9  ;;  %v606_v28 = vld [vmem:[#allocation5 + $0xc8] sm:$0xff]   ;;  %v610_v34 = vld [vmem:[#allocation5 + $0xc0] sm:$0xff]   ;;  %v615_v39 = vld [vmem:[#allocation2 + $0x10] ss:$8 sps:$4 sm:$0xff]  }
  0x29   :  { %v607_v29 = vld [vmem:[#allocation5 + $0x8] sm:$0xff]   ;;  %v611_v35 = vld [vmem:[#allocation5] sm:$0xff]   ;;  %v618_v41 = vld [vmem:[#allocation2 + $0x14] ss:$8 sps:$4 sm:$0xff]   ;;  %v76_v43 = vrot.slane %v615_v39, %v61_v37 }
  0x2a   :  { %531 = vmatpush3.bf16.msra.mxu0 %v591_v10  ;;  %v608_v30 = vld [vmem:[#allocation5 + $0x88] sm:$0xff]   ;;  %v612_v36 = vld [vmem:[#allocation5 + $0x80] sm:$0xff]   ;;  %v83_v45 = vrot.slane %v618_v41, %v61_v37 }
  0x2b   :  { %553 = vmatpush3.bf16.msra.mxu1 %v592_v11  ;;  %532 = vmatprep.subr.bf16.mxu0 %v593_v12  ;;  %v613_v38 = vld [vmem:[#allocation2] ss:$8 sps:$4 sm:$0xff]   ;;  %v617_v40 = vld [vmem:[#allocation2 + $0x4] ss:$8 sps:$4 sm:$0xff]  }
  0x2c   :  { %554 = vmatprep.subr.bf16.mxu1 %v594_v13  ;;  %v62_v42 = vrot.slane %v613_v38, %v61_v37  ;;  %v69_v44 = vrot.slane %v617_v40, %v61_v37  ;;  %v491_v58 = vld [vmem:[%s730_s2] ss:$0 sm:$0xff] }
  0x2e   :  { %533 = vmatpush3.bf16.msra.mxu0 %v595_v14  ;;  %v85_v46 = vcombine.high %v62_v42, %v76_v43  ;;  %v84_v47 = vcombine.low %v62_v42, %v76_v43  ;;  %v87_v48 = vcombine.high %v69_v44, %v83_v45  ;;  %v86_v49 = vcombine.low %v69_v44, %v83_v45 }
  0x2f   :  { %555 = vmatpush3.bf16.msra.mxu1 %v596_v15  ;;  %534 = vmatprep.subr.bf16.mxu0 %v597_v16 }
  0x30   :  { %556 = vmatprep.subr.bf16.mxu1 %v598_v17  ;;  %v93_v50 = vpack.c.bf16 %v85_v46, %v85_v46  ;;  %v92_v51 = vpack.c.bf16 %v84_v47, %v84_v47  ;;  %v95_v52 = vpack.c.bf16 %v87_v48, %v87_v48  ;;  %v94_v53 = vpack.c.bf16 %v86_v49, %v86_v49 }
  0x32   :  { %535 = vmatpush3.bf16.msra.mxu0 %v599_v18  ;;  %391 = vmatprep.mubr.bf16.mxu0 %v93_v50 }
  0x33   :  { %557 = vmatpush3.bf16.msra.mxu1 %v600_v19  ;;  %536 = vmatprep.subr.bf16.mxu0 %v601_v20 }
  0x34   :  { %558 = vmatprep.subr.bf16.mxu1 %v602_v21  ;;  %431 = vmatprep.mubr.bf16.mxu1 %v95_v52 }
  0x36   :  { %537 = vmatpush3.bf16.msra.mxu0 %v603_v22 }
  0x37   :  { %559 = vmatpush3.bf16.msra.mxu1 %v604_v23  ;;  %538 = vmatprep.subr.bf16.mxu0 %v605_v27 }
  0x38   :  { %560 = vmatprep.subr.bf16.mxu1 %v606_v28 }
  0x3a   :  { %539 = vmatpush3.bf16.msra.mxu0 %v607_v29 }
  0x3b   :  { %561 = vmatpush3.bf16.msra.mxu1 %v608_v30  ;;  %540 = vmatprep.subr.bf16.mxu0 %v609_v33 }
  0x3c   :  { %562 = vmatprep.subr.bf16.mxu1 %v610_v34 }
  0x3e   :  { %541 = vmatpush3.bf16.msra.mxu0 %v611_v35 }
  0x3f   :  { %563 = vmatpush3.bf16.msra.mxu1 %v612_v36 }
  0x41   :  { %392 = vmatmul.mubr.bf16.vlgmr.msra.gmra.mxu0 %v92_v51 }
  0x42   :  { %432 = vmatmul.mubr.bf16.vlgmr.msra.gmra.mxu1 %v94_v53 }
 0x101   :  { %v542_v56 = vpop.f32.mrf.mxu0 }
 0x102   :  { %v564_v57 = vpop.f32.mrf.mxu1 }
 0x103   :  { %v543_v59 = vpop.f32.mrf.mxu0 }
 0x104   :  { %v544_v60 = vadd.f32 %v543_v59, %v542_v56  ;;  %v565_v61 = vpop.f32.mrf.mxu1 }
 0x105   :  { %v545_v63 = vpop.f32.mrf.mxu0  ;;  %v566_v1 = vadd.f32 %v565_v61, %v564_v57 }
 0x106   :  { %v394_v0 = vadd.f32 %v544_v60, %v491_v58  ;;  %v567_v2 = vpop.f32.mrf.mxu1 }
 0x107   :  { %v546_v3 = vpop.f32.mrf.mxu0 }
 0x108   :  { %v434_v4 = vadd.f32 %v566_v1, %v394_v0  ;;  %v568_v6 = vpop.f32.mrf.mxu1 }
 0x10a   :  { %v439_v7 = vpack.c.bf16 %v434_v4, %v434_v4 }
 0x10c   :  { %v447_v8 = vrot.slane %v439_v7, %v446_v5 }
 0x10e   :  { %v448_v9 = vcombine.high %v447_v8, %v447_v8  ;;  %v455_v10 = vrot.slane %v447_v8, %v446_v5  ;;  %524 = vst.sshfl [vmem:[#allocation7] sm:$0x1 pattern:$0x73625140] %v447_v8 }
 0x110   :  { %v462_v11 = vrot.slane %v448_v9, %v446_v5  ;;  %v463_v12 = vcombine.high %v455_v10, %v455_v10  ;;  %525 = vst.sshfl [vmem:[#allocation7 + $0x1] sm:$0x1 pattern:$0x73625140] %v448_v9 }
 0x112   :  { %v464_v13 = vcombine.high %v462_v11, %v462_v11  ;;  %471 = vst [vmem:[#allocation7 + $0x2] sm:$0x1] %v463_v12 }
 0x114   :  { %472 = vst [vmem:[#allocation7 + $0x3] sm:$0x1] %v464_v13 }
 0x115   :  { %477 = vsyncadd [#allocation4], 48  ;;  %s693_s2 = smov [#allocation7]  }
 0x116   :  { %s478_s27 = sshll.u32 %s693_s2, 4  ;;  %s479_s27 = int_to_ptr.vmem [resolvable:$true] %s478_s27 }
 0x117   :  { %s659_s28 = scalar_lea.vmem %s479_s27, 16  ;;  %s663_s29 = scalar_lea.vmem %s479_s27, 64 }
 0x118   :  { %p660_p10 = scmp.ne.s32.totalorder %s479_s27, %s659_s28  ;;  %p664_p11 = scmp.lt.s32.totalorder %s479_s27, %s479_s27 }
 0x119   :  { %p665_p12 = scmp.lt.s32.totalorder %s663_s29, %s659_s28 }
 0x11b   :  { %p666_p13 = por %p665_p12, %p664_p11 }
 0x11d   :  { %p667_p0 = pnand %p666_p13, %p660_p10 }
 0x11f   :  { %670 = shalt.err (!%p667_p0)
}
 0x120   :  { %s694_s30 = smov 16   ;;  %s695_s4 = smov 1  }
 0x121   :  { %484 = dma.vmem_to_hbm [thread:$0]  %s479_s27, 16, %s731_s3, [#allocation4], %s694_s30, %s694_s30, %s695_s4  }
 0x122   :  { %683 = dma.done.wait [#allocation4], 64  }
 0x123   :  { %684 = vsyncadd [#allocation4], 4294967232 }
 0x124   :  { %488 = vsyncpa [#allocation3], 1 }
 0x125   :  { %489 = vsyncpa [#allocation6], 1 }
 0x126   :  { %490 = vsyncpa [#allocation4], 1 }

</bundles_post_ra>
